<compile_context>
chip_gen: v7x
topology: tpu7x:2x2x1
jax: 0.10.0
libtpu: 0.0.40
codegen_flags: <defaults>
</compile_context>

<pallas_src>
import jax
import jax.numpy as jnp
from jax.experimental import pallas as pl
from jax.experimental.pallas import tpu as pltpu

_LANE = 128  # lane width: last-dim alignment


def _round_up(n, m):
    return ((n + m - 1) // m) * m


def _cdiv(a, b):
    return -(-a // b)


def _device_kind():
    try:
        return jax.devices()[0].device_kind.lower()
    except Exception:
        return ""


def _make_vfield_kernel(bf16_epilogue):
    def kernel(x_ref, w1_ref, b1_ref, w2_ref, b2_ref, o_ref):
        # x_ref: (TB, Dp) caller dtype, w1_ref: (Dp, Hp) bf16, b1_ref: (1, Hp) f32
        # w2_ref: (Hp, Dp) bf16,        b2_ref: (1, Dp) f32,  o_ref: (TB, Dp) caller dtype
        x = x_ref[...].astype(jnp.bfloat16)            # in-kernel cast (no extra HBM pass)
        h = jnp.dot(x, w1_ref[...], preferred_element_type=jnp.float32)  # MXU, f32 acc
        if bf16_epilogue:
            # v6e / v7x: bf16 VPU + EUP -> bias add / tanh in bf16.
            h = jnp.tanh((h + b1_ref[...]).astype(jnp.bfloat16))
        else:
            # v5e and older: no bf16 elementwise units; keep the epilogue f32.
            h = jnp.tanh(h + b1_ref[...]).astype(jnp.bfloat16)
        y = jnp.dot(h, w2_ref[...], preferred_element_type=jnp.float32)  # MXU, f32 acc
        y = y + b2_ref[...]
        o_ref[...] = y.astype(o_ref.dtype)
    return kernel


def t_velocity_field(t, x, w1, b1, w2, b2, *, max_block_b=2048):
    """Pallas implementation of T_VelocityField(V).forward(t, x) == V(x)."""
    del t  # time argument is ignored by the module's forward pass

    B, D = x.shape
    H = w1.shape[1]
    assert w1.shape == (D, H) and w2.shape == (H, D)
    assert b1.shape == (1, H) and b2.shape == (1, D)

    # --- chip-generation-aware knobs -----------------------------------------
    kind = _device_kind()
    is_v5_or_older = any(s in kind for s in ("v2", "v3", "v4", "v5"))
    has_128mib_vmem = any(s in kind for s in ("v4", "v5", "v6"))
    multi_core = not any(s in kind for s in ("v2", "v3", "v4", "v5", "v6"))  # v7x: 2 TCs
    bf16_epilogue = not is_v5_or_older
    vmem_limit = (100 << 20) if has_128mib_vmem else (48 << 20)

    # Lane-pad feature dims -> lane-dense loads/stores, full-width MXU columns.
    Dp = _round_up(D, _LANE)
    Hp = _round_up(H, _LANE)

    # --- batch tiling ---------------------------------------------------------
    x_bytes = jnp.dtype(x.dtype).itemsize
    # Resident operands: bf16 W1 + W2, single-buffered (pl.Buffered(1)), + f32 biases.
    weight_bytes = 2 * 2 * Dp * Hp + 4 * (Hp + Dp)
    # Per batch row in VMEM: double-buffered x tile + double-buffered out tile.
    per_row_bytes = 4 * Dp * x_bytes
    budget = int(vmem_limit * 0.6) - weight_bytes
    # TODO(synk): stream W1/W2 over a K grid axis (with an f32 VMEM accumulator)
    # once resident weights alone approach the VMEM budget (large hidden dims).
    rows_cap = max(budget // per_row_bytes, 16) if budget > 0 else 16

    min_rows = 16 if B >= 16 else 8          # bf16 sublane packing when possible
    max_rows = max(min(max_block_b, rows_cap), min_rows)
    n_steps = max(_cdiv(B, max_rows), 1)
    if multi_core and B >= 2 * min_rows:
        # v7x: guarantee >=2 grid steps so the "parallel" axis can split across cores.
        n_steps = max(n_steps, 2)
    TB = _round_up(_cdiv(B, n_steps), min_rows)   # balanced last tile
    Bp = _round_up(B, TB)
    grid = (Bp // TB,)

    # --- operand preparation (pad only when actually required) ----------------
    def _maybe_pad2(a, rows, cols):
        pr, pc = rows - a.shape[0], cols - a.shape[1]
        if pr == 0 and pc == 0:
            return a
        return jnp.pad(a, ((0, pr), (0, pc)))

    xp = _maybe_pad2(x, Bp, Dp)                          # native dtype; cast in kernel
    w1p = _maybe_pad2(w1.astype(jnp.bfloat16), Dp, Hp)   # resident bf16 weights
    w2p = _maybe_pad2(w2.astype(jnp.bfloat16), Hp, Dp)
    b1p = _maybe_pad2(b1.astype(jnp.float32), 1, Hp)     # biases stay f32
    b2p = _maybe_pad2(b2.astype(jnp.float32), 1, Dp)

    resident = dict(pipeline_mode=pl.Buffered(1))        # constant index_map -> 1 buffer

    cost = pl.CostEstimate(
        flops=4 * Bp * Dp * Hp,                           # two matmuls
        transcendentals=Bp * Hp,                          # tanh
        bytes_accessed=(2 * Bp * Dp * x_bytes             # x in + out back
                        + 2 * (Dp * Hp + Hp * Dp)         # bf16 weights
                        + 4 * (Hp + Dp)),                 # f32 biases
    )

    out = pl.pallas_call(
        _make_vfield_kernel(bf16_epilogue),
        out_shape=jax.ShapeDtypeStruct((Bp, Dp), x.dtype),   # caller's dtype writeback
        grid_spec=pl.GridSpec(
            grid=grid,
            in_specs=[
                pl.BlockSpec((TB, Dp), lambda i: (i, 0)),              # x: tiled over batch
                pl.BlockSpec((Dp, Hp), lambda i: (0, 0), **resident),  # W1: resident
                pl.BlockSpec((1, Hp), lambda i: (0, 0), **resident),   # b1: resident
                pl.BlockSpec((Hp, Dp), lambda i: (0, 0), **resident),  # W2: resident
                pl.BlockSpec((1, Dp), lambda i: (0, 0), **resident),   # b2: resident
            ],
            out_specs=pl.BlockSpec((TB, Dp), lambda i: (i, 0)),
        ),
        compiler_params=pltpu.CompilerParams(
            dimension_semantics=("parallel",),    # megacore split over batch
            vmem_limit_bytes=vmem_limit,
        ),
        cost_estimate=cost,
    )(xp, w1p, b1p, w2p, b2p)

    if Bp != B or Dp != D:
        out = out[:B, :D]
    return out


def reference(t, x, w1, b1, w2, b2):
    # Pure-JAX f32 reference of V(x) (time ignored), for correctness checking.
    h = jnp.tanh(x.astype(jnp.float32) @ w1.astype(jnp.float32) + b1)
    return (h @ w2.astype(jnp.float32) + b2).astype(x.dtype)


if __name__ == "__main__":
    B, D, H = 8, 32, 64  # small shapes consistent with an MLP velocity field

    key = jax.random.PRNGKey(0)
    kx, kw1, kb1, kw2, kb2 = jax.random.split(key, 5)

    x = jax.random.normal(kx, (B, D), dtype=jnp.float32)
    # Deterministic synthetic parameters (no checkpoint loading).
    w1 = jax.random.normal(kw1, (D, H), dtype=jnp.float32) * 0.1
    b1 = jax.random.normal(kb1, (1, H), dtype=jnp.float32) * 0.01
    w2 = jax.random.normal(kw2, (H, D), dtype=jnp.float32) * 0.1
    b2 = jax.random.normal(kb2, (1, D), dtype=jnp.float32) * 0.01

    t = jnp.float32(0.5)  # ignored by the forward pass, matching the module

    out = t_velocity_field(t, x, w1, b1, w2, b2)
    jax.block_until_ready(out)

    ref = reference(t, x, w1, b1, w2, b2)
    assert out.shape == (B, D)
    assert out.dtype == x.dtype
    # bf16 matmul inputs / bf16 tanh epilogue (f32 accumulation) -> loosened tolerance.
    assert jnp.allclose(out, ref, atol=2e-2, rtol=2e-2), (
        float(jnp.max(jnp.abs(out - ref)))
    )

    print("KERNEL_OK")
</pallas_src>

<mosaic_0001>
module attributes {stable_mosaic.version = 11 : i64} {
  func.func @kernel(%arg0: i32, %arg1: memref<8x128xf32, #tpu.memory_space<vmem>>, %arg2: memref<128x128xbf16, #tpu.memory_space<vmem>>, %arg3: memref<1x128xf32, #tpu.memory_space<vmem>>, %arg4: memref<128x128xbf16, #tpu.memory_space<vmem>>, %arg5: memref<1x128xf32, #tpu.memory_space<vmem>>, %arg6: memref<8x128xf32, #tpu.memory_space<vmem>>) attributes {dimension_semantics = [#tpu.dimension_semantics<parallel>], iteration_bounds = array<i64: 1>, scalar_prefetch = 0 : i64, scratch_operands = 0 : i64, tpu.core_type = #tpu.core_type<tc>, window_params = [{transform_indices = @transform_0, window_bounds = array<i64: 8, 128>}, {pipeline_mode = #tpu.pipeline_mode<synchronous>, transform_indices = @transform_1, window_bounds = array<i64: 128, 128>}, {pipeline_mode = #tpu.pipeline_mode<synchronous>, transform_indices = @transform_2, window_bounds = array<i64: 1, 128>}, {pipeline_mode = #tpu.pipeline_mode<synchronous>, transform_indices = @transform_3, window_bounds = array<i64: 128, 128>}, {pipeline_mode = #tpu.pipeline_mode<synchronous>, transform_indices = @transform_4, window_bounds = array<i64: 1, 128>}, {transform_indices = @transform_5, window_bounds = array<i64: 8, 128>}]} {
    %c0 = arith.constant 0 : index
    %c0_0 = arith.constant 0 : index
    %0 = vector.load %arg1[%c0, %c0_0] : memref<8x128xf32, #tpu.memory_space<vmem>>, vector<8x128xf32>
    %1 = arith.truncf %0 : vector<8x128xf32> to vector<8x128xbf16>
    %c0_1 = arith.constant 0 : index
    %c0_2 = arith.constant 0 : index
    %2 = vector.load %arg2[%c0_1, %c0_2] : memref<128x128xbf16, #tpu.memory_space<vmem>>, vector<128x128xbf16>
    %cst = arith.constant dense<0.000000e+00> : vector<8x128xf32>
    %3 = tpu.matmul %1, %2, %cst {dimension_numbers = #tpu.dot_dimension_numbers<[1], [0], [0], [1], [0, 0, 1, 1], [], []>} : vector<8x128xbf16>, vector<128x128xbf16>, vector<8x128xf32> -> vector<8x128xf32>
    %c0_3 = arith.constant 0 : index
    %c0_4 = arith.constant 0 : index
    %4 = vector.load %arg3[%c0_3, %c0_4] : memref<1x128xf32, #tpu.memory_space<vmem>>, vector<1x128xf32>
    %5 = vector.broadcast %4 : vector<1x128xf32> to vector<8x128xf32>
    %6 = arith.addf %3, %5 : vector<8x128xf32>
    %7 = arith.truncf %6 : vector<8x128xf32> to vector<8x128xbf16>
    %8 = math.tanh %7 : vector<8x128xbf16>
    %c0_5 = arith.constant 0 : index
    %c0_6 = arith.constant 0 : index
    %9 = vector.load %arg4[%c0_5, %c0_6] : memref<128x128xbf16, #tpu.memory_space<vmem>>, vector<128x128xbf16>
    %cst_7 = arith.constant dense<0.000000e+00> : vector<8x128xf32>
    %10 = tpu.matmul %8, %9, %cst_7 {dimension_numbers = #tpu.dot_dimension_numbers<[1], [0], [0], [1], [0, 0, 1, 1], [], []>} : vector<8x128xbf16>, vector<128x128xbf16>, vector<8x128xf32> -> vector<8x128xf32>
    %c0_8 = arith.constant 0 : index
    %c0_9 = arith.constant 0 : index
    %11 = vector.load %arg5[%c0_8, %c0_9] : memref<1x128xf32, #tpu.memory_space<vmem>>, vector<1x128xf32>
    %12 = vector.broadcast %11 : vector<1x128xf32> to vector<8x128xf32>
    %13 = arith.addf %10, %12 : vector<8x128xf32>
    %c0_10 = arith.constant 0 : index
    %c0_11 = arith.constant 0 : index
    %14 = vector.load %arg6[%c0_10, %c0_11] : memref<8x128xf32, #tpu.memory_space<vmem>>, vector<8x128xf32>
    tpu.vector_store %arg6[%c0_10, %c0_11], %13 {strides = array<i32>} : memref<8x128xf32, #tpu.memory_space<vmem>>, vector<8x128xf32>,
    return
  }
  func.func @transform_0(%arg0: i32) -> (i32, i32) {
    %c0_i32 = arith.constant 0 : i32
    %c0_i32_0 = arith.constant 0 : i32
    return %arg0, %c0_i32 : i32, i32
  }
  func.func @transform_1(%arg0: i32) -> (i32, i32) {
    %c0_i32 = arith.constant 0 : i32
    %c0_i32_0 = arith.constant 0 : i32
    %c0_i32_1 = arith.constant 0 : i32
    return %c0_i32, %c0_i32_0 : i32, i32
  }
  func.func @transform_2(%arg0: i32) -> (i32, i32) {
    %c0_i32 = arith.constant 0 : i32
    %c0_i32_0 = arith.constant 0 : i32
    %c0_i32_1 = arith.constant 0 : i32
    return %c0_i32, %c0_i32_0 : i32, i32
  }
  func.func @transform_3(%arg0: i32) -> (i32, i32) {
    %c0_i32 = arith.constant 0 : i32
    %c0_i32_0 = arith.constant 0 : i32
    %c0_i32_1 = arith.constant 0 : i32
    return %c0_i32, %c0_i32_0 : i32, i32
  }
  func.func @transform_4(%arg0: i32) -> (i32, i32) {
    %c0_i32 = arith.constant 0 : i32
    %c0_i32_0 = arith.constant 0 : i32
    %c0_i32_1 = arith.constant 0 : i32
    return %c0_i32, %c0_i32_0 : i32, i32
  }
  func.func @transform_5(%arg0: i32) -> (i32, i32) {
    %c0_i32 = arith.constant 0 : i32
    %c0_i32_0 = arith.constant 0 : i32
    return %arg0, %c0_i32 : i32, i32
  }
}

</mosaic_0001>

<bundles_post_ra>
// kernel: tpu_custom_call.1
= control target key start
LH: loop header
LB: loop body
LE: loop exit
PB: predicated region body
PF: predicated region fallthrough
CT: control target
= control target key end

     0   :  { %10 = vsyncpa [#allocation3], 0  ;;  %s598_s0 = inlined_call_operand.hbm [shape: f32[8,128], index: 0, kind: input, shape index: {}]   ;;  %s599_s1 = inlined_call_operand.hbm [shape: bf16[128,128], index: 1, kind: input, shape index: {}]   ;;  %s600_s2 = inlined_call_operand.vmem [shape: f32[1,128], index: 2, kind: input, shape index: {}]   ;;  %s601_s3 = inlined_call_operand.hbm [shape: bf16[128,128], index: 3, kind: input, shape index: {}]   ;;  %s602_s4 = inlined_call_operand.vmem [shape: f32[1,128], index: 4, kind: input, shape index: {}]   ;;  %s603_s5 = inlined_call_operand.hbm [shape: f32[8,128], index: 5, kind: output, shape index: {}]  }
   0x1   :  { %11 = vsyncpa [#allocation6], 0 }
   0x2   :  { %12 = vsyncpa [#allocation4], 0  ;;  %s500_s18 = smov [#allocation5]   ;;  %s406_s22 = scalar_lea.hbm %s599_s1, 1024 }
   0x3   :  { %s28_s19 = sshll.u32 %s500_s18, 4  ;;  %p407_p0 = scmp.ne.s32.totalorder %s599_s1, %s406_s22  ;;  %s29_s19 = int_to_ptr.vmem [resolvable:$true] %s28_s19 }
   0x4   :  { %p410_p1 = scmp.lt.u32.totalorder %s406_s22, %s599_s1 }
   0x6   :  { %p412_p2 = pnand %p410_p1, %p407_p0 }
   0x8   :  { %415 = shalt.err (!%p412_p2)
}
   0x9   :  { %s416_s27 = scalar_lea.vmem %s29_s19, 1024  ;;  %p421_p4 = scmp.lt.s32.totalorder %s29_s19, %s29_s19 }
   0xa   :  { %p417_p3 = scmp.ne.s32.totalorder %s29_s19, %s416_s27  ;;  %p422_p5 = scmp.lt.s32.totalorder %s416_s27, %s416_s27 }
   0xc   :  { %p423_p6 = por %p422_p5, %p421_p4 }
   0xe   :  { %p424_p7 = pnand %p423_p6, %p417_p3 }
  0x10   :  { %427 = shalt.err (!%p424_p7)
}
  0x11   :  { %s501_s28 = smov 64   ;;  %s502_s29 = smov 4  }
  0x12   :  { %34 = dma.hbm_to_vmem [thread:$0]  %s599_s1, 1024, %s29_s19, [#allocation6], %s501_s28, %s501_s28, %s502_s29  }
  0x13   :  { %s503_s7 = smov [#allocation2]   ;;  %s504_s9 = smov [#allocation7]  }
  0x14   :  { %s19_s8 = sshll.u32 %s503_s7, 4  ;;  %s42_s10 = sshll.u32 %s504_s9, 4  ;;  %s20_s8 = int_to_ptr.vmem [resolvable:$true] %s19_s8  ;;  %s43_s10 = int_to_ptr.vmem [resolvable:$true] %s42_s10 }
  0x15   :  { %s428_s13 = scalar_lea.hbm %s598_s0, 128 }
  0x16   :  { %p429_p8 = scmp.ne.s32.totalorder %s598_s0, %s428_s13  ;;  %p432_p9 = scmp.lt.u32.totalorder %s428_s13, %s598_s0 }
  0x18   :  { %p434_p10 = pnand %p432_p9, %p429_p8 }
  0x1a   :  { %437 = shalt.err (!%p434_p10)
}
  0x1b   :  { %s438_s1 = scalar_lea.vmem %s20_s8, 128  ;;  %p443_p12 = scmp.lt.s32.totalorder %s20_s8, %s20_s8 }
  0x1c   :  { %p439_p11 = scmp.ne.s32.totalorder %s20_s8, %s438_s1  ;;  %p444_p13 = scmp.lt.s32.totalorder %s438_s1, %s438_s1 }
  0x1e   :  { %p445_p0 = por %p444_p13, %p443_p12 }
  0x20   :  { %p446_p1 = pnand %p445_p0, %p439_p11 }
  0x22   :  { %449 = shalt.err (!%p446_p1)
}
  0x23   :  { %22 = dma.hbm_to_vmem [thread:$0]  %s598_s0, 128, %s20_s8, [#allocation3]  }
  0x24   :  { %s450_s22 = scalar_lea.hbm %s601_s3, 1024 }
  0x25   :  { %p451_p2 = scmp.ne.s32.totalorder %s601_s3, %s450_s22  ;;  %p454_p3 = scmp.lt.u32.totalorder %s450_s22, %s601_s3 }
  0x27   :  { %p456_p4 = pnand %p454_p3, %p451_p2 }
  0x29   :  { %459 = shalt.err (!%p456_p4)
}
  0x2a   :  { %s460_s27 = scalar_lea.vmem %s43_s10, 1024  ;;  %p465_p6 = scmp.lt.s32.totalorder %s43_s10, %s43_s10 }
  0x2b   :  { %p461_p5 = scmp.ne.s32.totalorder %s43_s10, %s460_s27  ;;  %p466_p7 = scmp.lt.s32.totalorder %s460_s27, %s460_s27 }
  0x2d   :  { %p467_p8 = por %p466_p7, %p465_p6 }
  0x2f   :  { %p468_p9 = pnand %p467_p8, %p461_p5 }
  0x31   :  { %471 = shalt.err (!%p468_p9)
}
  0x32   :  { %48 = dma.hbm_to_vmem [thread:$0]  %s601_s3, 1024, %s43_s10, [#allocation6], %s501_s28, %s501_s28, %s502_s29  }
  0x33   :  { %494 = dma.done.wait [#allocation3], 128  }
  0x34   :  { %495 = vsyncadd [#allocation3], 4294967168 }
  0x35   :  { %496 = dma.done.wait [#allocation6], 2048  }
  0x36   :  { %497 = vsyncadd [#allocation6], 4294965248  ;;  %v505_v0 = vmov 0.0   ;;  %vm506_vm0 = vmmov 0   ;;  %v388_v1 = vld [vmem:[#allocation5] sm:$0xff]   ;;  %v389_v2 = vld [vmem:[#allocation5 + $0x8] sm:$0xff]  }
  0x37   :  { %340 = vmatprep.subr.bf16.mxu0 %v505_v0  ;;  %356 = vmatprep.mubr.msk.bf16.mxu0 %vm506_vm0, %v505_v0  ;;  %v390_v3 = vld [vmem:[#allocation5 + $0x10] sm:$0xff]   ;;  %v396_v4 = vld [vmem:[#allocation7] sm:$0xff]   ;;  %v391_v5 = vld [vmem:[#allocation5 + $0x18] sm:$0xff]   ;;  %s507_s7 = smov [#allocation8]  }
  0x38   :  { %360 = vmatprep.subr.bf16.mxu1 %v505_v0  ;;  %376 = vmatprep.mubr.msk.bf16.mxu1 %vm506_vm0, %v505_v0  ;;  %v397_v6 = vld [vmem:[#allocation7 + $0x8] sm:$0xff]   ;;  %v392_v7 = vld [vmem:[#allocation5 + $0x20] sm:$0xff]   ;;  %v398_v8 = vld [vmem:[#allocation7 + $0x10] sm:$0xff]   ;;  %s294_s8 = sshll.u32 %s507_s7, 4  ;;  %s295_s8 = int_to_ptr.vmem [resolvable:$true] %s294_s8 }
  0x39   :  { %341 = vmatpush3.bf16.msra.mxu0 %v388_v1  ;;  %361 = vmatpush3.bf16.msra.mxu1 %v396_v4  ;;  %v393_v9 = vld [vmem:[#allocation5 + $0x28] sm:$0xff]   ;;  %v399_v10 = vld [vmem:[#allocation7 + $0x18] sm:$0xff]   ;;  %v394_v11 = vld [vmem:[#allocation5 + $0x30] sm:$0xff]   ;;  %p477_p11 = scmp.lt.s32.totalorder %s295_s8, %s295_s8 }
  0x3a   :  { %342 = vmatprep.subr.bf16.mxu0 %v505_v0  ;;  %362 = vmatprep.subr.bf16.mxu1 %v505_v0  ;;  %v395_v12 = vld [vmem:[#allocation5 + $0x38] sm:$0xff]   ;;  %v400_v15 = vld [vmem:[#allocation7 + $0x20] sm:$0xff]   ;;  %v401_v16 = vld [vmem:[#allocation7 + $0x28] sm:$0xff]  }
  0x3b   :  { %v61_v13 = vld [vmem:[#allocation2] sm:$0xff]  ;;  %v402_v17 = vld [vmem:[#allocation7 + $0x30] sm:$0xff]  }
  0x3c   :  { %v62_v14 = vpack.c.bf16 %v61_v13, %v61_v13  ;;  %v403_v18 = vld [vmem:[#allocation7 + $0x38] sm:$0xff]  }
  0x3d   :  { %343 = vmatpush3.bf16.msra.mxu0 %v389_v2  ;;  %363 = vmatpush3.bf16.msra.mxu1 %v397_v6  ;;  %v304_v19 = vld [vmem:[%s600_s2] ss:$0 sm:$0xff]  ;;  %s472_s2 = scalar_lea.vmem %s295_s8, 128 }
  0x3e   :  { %344 = vmatprep.subr.bf16.mxu0 %v505_v0  ;;  %364 = vmatprep.subr.bf16.mxu1 %v505_v0  ;;  %v313_v27 = vld [vmem:[%s602_s4] ss:$0 sm:$0xff]  ;;  %p473_p10 = scmp.ne.s32.totalorder %s295_s8, %s472_s2  ;;  %p478_p12 = scmp.lt.s32.totalorder %s472_s2, %s472_s2 }
  0x40   :  { %p479_p13 = por %p478_p12, %p477_p11 }
  0x41   :  { %345 = vmatpush3.bf16.msra.mxu0 %v390_v3  ;;  %365 = vmatpush3.bf16.msra.mxu1 %v398_v8 }
  0x42   :  { %346 = vmatprep.subr.bf16.mxu0 %v505_v0  ;;  %366 = vmatprep.subr.bf16.mxu1 %v505_v0  ;;  %p480_p0 = pnand %p479_p13, %p473_p10 }
  0x45   :  { %347 = vmatpush3.bf16.msra.mxu0 %v391_v5  ;;  %367 = vmatpush3.bf16.msra.mxu1 %v399_v10 }
  0x46   :  { %348 = vmatprep.subr.bf16.mxu0 %v505_v0  ;;  %368 = vmatprep.subr.bf16.mxu1 %v505_v0 }
  0x49   :  { %349 = vmatpush3.bf16.msra.mxu0 %v392_v7  ;;  %369 = vmatpush3.bf16.msra.mxu1 %v400_v15 }
  0x4a   :  { %350 = vmatprep.subr.bf16.mxu0 %v505_v0  ;;  %370 = vmatprep.subr.bf16.mxu1 %v505_v0 }
  0x4d   :  { %351 = vmatpush3.bf16.msra.mxu0 %v393_v9  ;;  %371 = vmatpush3.bf16.msra.mxu1 %v401_v16 }
  0x4e   :  { %352 = vmatprep.subr.bf16.mxu0 %v505_v0  ;;  %372 = vmatprep.subr.bf16.mxu1 %v505_v0 }
  0x51   :  { %353 = vmatpush3.bf16.msra.mxu0 %v394_v11  ;;  %373 = vmatpush3.bf16.msra.mxu1 %v402_v17 }
  0x52   :  { %354 = vmatprep.subr.bf16.mxu0 %v505_v0  ;;  %374 = vmatprep.subr.bf16.mxu1 %v505_v0 }
  0x55   :  { %355 = vmatpush3.bf16.msra.mxu0 %v395_v12  ;;  %375 = vmatpush3.bf16.msra.mxu1 %v403_v18 }
  0x58   :  { %357 = vmatmul.mubr.bf16.vlgmr.msra.gmra.mrb[0].mxu0 %v62_v14 }
 0x12b   :  { %v168_v20 = vpop.f32.mrb[0].mxu0 }
 0x12c   :  { %v169_v21 = vadd.f32 %v304_v19, %v168_v20  ;;  %v358_v22 = vpop.f32.mrb[1].mxu0 }
 0x12d   :  { %v171_v23 = vpop.f32.mrb[2].mxu0 }
 0x12e   :  { %v174_v24 = vpack.c.bf16 %v169_v21, %v169_v21  ;;  %v359_v25 = vpop.f32.mrb[3].mxu0 }
 0x130   :  { %404 = vtanh.bf16 %v174_v24 }
 0x13b   :  { %v405_v26 = vpop.eup %404 }
 0x13c   :  { %377 = vmatmul.mubr.bf16.vlgmr.msra.gmra.mrb[0].mxu1 %v405_v26 }
 0x20f   :  { %v281_v28 = vpop.f32.mrb[0].mxu1 }
 0x210   :  { %v282_v29 = vadd.f32 %v313_v27, %v281_v28  ;;  %v378_v30 = vpop.f32.mrb[1].mxu1 }
 0x211   :  { %v284_v31 = vpop.f32.mrb[2].mxu1 }
 0x212   :  { %287 = vst [vmem:[#allocation8] sm:$0xff] %v282_v29  ;;  %v379_v32 = vpop.f32.mrb[3].mxu1 }
 0x213   :  { %483 = shalt.err (!%p480_p0)
}
 0x214   :  { %s484_s4 = scalar_lea.hbm %s603_s5, 128 }
 0x215   :  { %p485_p1 = scmp.ne.s32.totalorder %s603_s5, %s484_s4  ;;  %p488_p2 = scmp.lt.u32.totalorder %s484_s4, %s603_s5 }
 0x217   :  { %p490_p3 = pnand %p488_p2, %p485_p1 }
 0x219   :  { %493 = shalt.err (!%p490_p3)
}
 0x21a   :  { %297 = dma.vmem_to_hbm [thread:$0]  %s295_s8, 128, %s603_s5, [#allocation4]  }
 0x21b   :  { %498 = dma.done.wait [#allocation4], 128  }
 0x21c   :  { %499 = vsyncadd [#allocation4], 4294967168 }
 0x21d   :  { %301 = vsyncpa [#allocation3], 1 }
 0x21e   :  { %302 = vsyncpa [#allocation6], 1 }
 0x21f   :  { %303 = vsyncpa [#allocation4], 1 }

</bundles_post_ra>
